<compile_context>
chip_gen: v5e
topology: v5e:2x2
jax: 0.10.0
libtpu: 0.0.40
codegen_flags: <defaults>
</compile_context>

<pallas_src>
import jax
import jax.numpy as jnp
from jax.experimental import pallas as pl
from jax.experimental.pallas import tpu as pltpu

HIDDEN = 256

# ~600-cycle per-grid-step overhead expressed in batch columns of MXU work;
# used to trade padding waste against number of grid steps.
_STEP_OVERHEAD_COLS = 192


def _round_up(x: int, m: int) -> int:
    return (x + m - 1) // m * m


def _choose_tiling(B: int):
    """Pick (TB, B_pad): TB a multiple of 128 (<= 2048), B_pad a multiple of TB.

    Minimizes padded columns + per-step overhead, and forces >= 2 grid steps
    whenever the 128-padded batch is >= 256 so both v7x TensorCores get work
    (harmless on single-TC v5e/v6e).
    """
    b128 = _round_up(B, 128)
    need_two_steps = b128 >= 256
    best = None
    for tb in (2048, 1024, 512, 256, 128):   # large-to-small => ties pick larger TB
        b_pad = _round_up(B, tb)
        grid = b_pad // tb
        if need_two_steps and grid < 2:
            continue
        score = b_pad + grid * _STEP_OVERHEAD_COLS
        if best is None or score < best[0]:
            best = (score, tb, b_pad)
    _, tb, b_pad = best
    return tb, b_pad


def _q_kernel(x_ref, w1_ref, w2_ref, cols_ref, o_ref):
    # Packed small operands: col0=b1, col1=b2, col2=w3 (as column), col3=b3.
    cols = cols_ref[...]                                   # (256, 4) f32
    b1 = cols[:, 0:1]
    b2 = cols[:, 1:2]
    w3 = cols[:, 2:3]
    b3 = cols[0:1, 3:4]

    # fc1: (256, K) @ (K, TB) on the MXU, bf16 inputs, f32 accumulation.
    h1 = jnp.dot(w1_ref[...], x_ref[...], preferred_element_type=jnp.float32)
    h1 = jnp.maximum(h1 + b1, 0.0)                         # bias + ReLU in f32 (v5e VPU)
    # fc2: (256, 256) @ (256, TB); downcast activations only for the MXU input.
    h2 = jnp.dot(w2_ref[...], h1.astype(jnp.bfloat16),
                 preferred_element_type=jnp.float32)
    h2 = jnp.maximum(h2 + b2, 0.0)
    # fc3: N=1 matmul replaced by VPU multiply + sublane reduction (XLU),
    # producing a lane-dense (1, TB) row with batch on the lane axis.
    out = jnp.sum(h2 * w3, axis=0, keepdims=True) + b3
    o_ref[...] = out.astype(o_ref.dtype)


@jax.jit
def q_forward(s, a, params):
    """s: (..., state_dim), a: (..., action_dim) -> (B, 1) float32."""
    w1, b1, w2, b2, w3, b3 = params
    s2 = s.reshape(-1, s.shape[-1])
    a2 = a.reshape(-1, a.shape[-1])
    x = jnp.concatenate([s2, a2], axis=-1)                 # (B, in_dim), f32
    B, in_dim = x.shape

    if B == 0:                                             # degenerate edge case
        return jnp.zeros((0, 1), jnp.float32)

    TB, B_pad = _choose_tiling(B)

    # Layout plumbing in the wrapper: cast to bf16, transpose so batch is the
    # lane axis, pad batch (padded cols compute relu(b)-chain junk, sliced off).
    xT = jnp.pad(x.T.astype(jnp.bfloat16), ((0, 0), (0, B_pad - B)))

    # Pack b1 / b2 / w3-column / b3 into one (256, 4) f32 slab: one resident
    # operand + one DMA instead of four (8,128)-tile-padded transfers.
    cols = jnp.stack(
        [b1.reshape(HIDDEN),
         b2.reshape(HIDDEN),
         w3.reshape(HIDDEN),
         jnp.broadcast_to(b3.reshape(()), (HIDDEN,))],
        axis=1).astype(jnp.float32)                        # (256, 4)

    const = lambda i: (0, 0)                               # resident operands
    flops = 2 * B_pad * (in_dim * HIDDEN + HIDDEN * HIDDEN + HIDDEN)
    bytes_accessed = (xT.size * 2 + w1.size * 2 + w2.size * 2
                      + cols.size * 4 + B_pad * 4)

    out = pl.pallas_call(
        _q_kernel,
        out_shape=jax.ShapeDtypeStruct((1, B_pad), jnp.float32),
        grid=(B_pad // TB,),
        in_specs=[
            pl.BlockSpec((in_dim, TB), lambda i: (0, i)),  # x tile (pipelined)
            pl.BlockSpec((HIDDEN, in_dim), const),         # W1 (resident)
            pl.BlockSpec((HIDDEN, HIDDEN), const),         # W2 (resident)
            pl.BlockSpec((HIDDEN, 4), const),              # packed b1|b2|w3|b3
        ],
        out_specs=pl.BlockSpec((1, TB), lambda i: (0, i)), # lane-dense output
        compiler_params=pltpu.CompilerParams(
            dimension_semantics=("parallel",)),
        cost_estimate=pl.CostEstimate(
            flops=flops, transcendentals=0, bytes_accessed=bytes_accessed),
    )(
        xT,
        w1.astype(jnp.bfloat16),
        w2.astype(jnp.bfloat16),
        cols,
    )
    return out[0, :B].reshape(B, 1)


def init_q_params(key, state_dim, action_dim):
    """PyTorch nn.Linear-style default init; weights stored as (out, in)."""
    in_dim = state_dim + action_dim
    ks = jax.random.split(key, 6)

    def linear(kw, kb, fan_in, fan_out):
        bound = 1.0 / jnp.sqrt(fan_in)
        w = jax.random.uniform(kw, (fan_out, fan_in), jnp.float32, -bound, bound)
        b = jax.random.uniform(kb, (fan_out,), jnp.float32, -bound, bound)
        return w, b

    w1, b1 = linear(ks[0], ks[1], in_dim, HIDDEN)
    w2, b2 = linear(ks[2], ks[3], HIDDEN, HIDDEN)
    w3, b3 = linear(ks[4], ks[5], HIDDEN, 1)
    return (w1, b1, w2, b2, w3, b3)


def q_reference(s, a, params, use_bf16=True):
    """Pure-JAX reference.  use_bf16=True mirrors the kernel's bf16-input /
    f32-accumulate numerics; use_bf16=False is the exact fp32 module."""
    w1, b1, w2, b2, w3, b3 = params
    x = jnp.concatenate(
        [s.reshape(-1, s.shape[-1]), a.reshape(-1, a.shape[-1])], axis=-1)
    cast = (lambda t: t.astype(jnp.bfloat16)) if use_bf16 else (lambda t: t)
    h1 = jnp.maximum(
        jnp.dot(cast(x), cast(w1).T, preferred_element_type=jnp.float32) + b1, 0.0)
    h2 = jnp.maximum(
        jnp.dot(cast(h1), cast(w2).T, preferred_element_type=jnp.float32) + b2, 0.0)
    return jnp.dot(h2, w3.T, preferred_element_type=jnp.float32) + b3


if __name__ == "__main__":
    key = jax.random.PRNGKey(0)
    k_params, k_s, k_a, k_s2, k_a2 = jax.random.split(key, 5)

    state_dim = 32
    action_dim = 8
    params = init_q_params(k_params, state_dim, action_dim)

    def check(batch, ks, ka):
        s = jax.random.normal(ks, (batch, state_dim), jnp.float32)
        a = jax.random.normal(ka, (batch, action_dim), jnp.float32)
        out = jax.block_until_ready(q_forward(s, a, params))
        ref_bf16 = q_reference(s, a, params, use_bf16=True)
        ref_f32 = q_reference(s, a, params, use_bf16=False)
        assert out.shape == (batch, 1), out.shape
        assert jnp.allclose(out, ref_bf16, atol=1e-3, rtol=1e-3), (
            f"B={batch} bf16-ref max abs err {jnp.max(jnp.abs(out - ref_bf16))}")
        assert jnp.allclose(out, ref_f32, atol=5e-2, rtol=5e-2), (
            f"B={batch} f32-ref max abs err {jnp.max(jnp.abs(out - ref_f32))}")

    check(8, k_s, k_a)       # single-tile / small-batch latency path
    check(260, k_s2, k_a2)   # multi-step grid (>=2 tiles) + batch padding path
    print("KERNEL_OK")
</pallas_src>

<mosaic_0001>
module attributes {stable_mosaic.version = 11 : i64} {
  func.func @_q_kernel(%arg0: i32, %arg1: memref<40x128xbf16, #tpu.memory_space<vmem>>, %arg2: memref<256x40xbf16, #tpu.memory_space<vmem>>, %arg3: memref<256x256xbf16, #tpu.memory_space<vmem>>, %arg4: memref<256x4xf32, #tpu.memory_space<vmem>>, %arg5: memref<1x128xf32, #tpu.memory_space<vmem>>) attributes {dimension_semantics = [#tpu.dimension_semantics<parallel>], iteration_bounds = array<i64: 1>, scalar_prefetch = 0 : i64, scratch_operands = 0 : i64, tpu.core_type = #tpu.core_type<tc>, window_params = [{transform_indices = @transform_0, window_bounds = array<i64: 40, 128>}, {pipeline_mode = #tpu.pipeline_mode<synchronous>, transform_indices = @transform_1, window_bounds = array<i64: 256, 40>}, {pipeline_mode = #tpu.pipeline_mode<synchronous>, transform_indices = @transform_2, window_bounds = array<i64: 256, 256>}, {pipeline_mode = #tpu.pipeline_mode<synchronous>, transform_indices = @transform_3, window_bounds = array<i64: 256, 4>}, {transform_indices = @transform_4, window_bounds = array<i64: 1, 128>}]} {
    %c0 = arith.constant 0 : index
    %c0_0 = arith.constant 0 : index
    %0 = vector.load %arg4[%c0, %c0_0] : memref<256x4xf32, #tpu.memory_space<vmem>>, vector<256x4xf32>
    %1 = vector.extract_strided_slice %0 {offsets = [0, 0], sizes = [256, 1], strides = [1, 1]} : vector<256x4xf32> to vector<256x1xf32>
    %2 = vector.extract_strided_slice %0 {offsets = [0, 1], sizes = [256, 1], strides = [1, 1]} : vector<256x4xf32> to vector<256x1xf32>
    %3 = vector.extract_strided_slice %0 {offsets = [0, 2], sizes = [256, 1], strides = [1, 1]} : vector<256x4xf32> to vector<256x1xf32>
    %4 = vector.extract_strided_slice %0 {offsets = [0, 3], sizes = [1, 1], strides = [1, 1]} : vector<256x4xf32> to vector<1x1xf32>
    %c0_1 = arith.constant 0 : index
    %c0_2 = arith.constant 0 : index
    %5 = vector.load %arg2[%c0_1, %c0_2] : memref<256x40xbf16, #tpu.memory_space<vmem>>, vector<256x40xbf16>
    %c0_3 = arith.constant 0 : index
    %c0_4 = arith.constant 0 : index
    %6 = vector.load %arg1[%c0_3, %c0_4] : memref<40x128xbf16, #tpu.memory_space<vmem>>, vector<40x128xbf16>
    %cst = arith.constant dense<0.000000e+00> : vector<256x128xf32>
    %7 = tpu.matmul %5, %6, %cst {dimension_numbers = #tpu.dot_dimension_numbers<[1], [0], [0], [1], [0, 0, 1, 1], [], []>} : vector<256x40xbf16>, vector<40x128xbf16>, vector<256x128xf32> -> vector<256x128xf32>
    %8 = vector.broadcast %1 : vector<256x1xf32> to vector<256x128xf32>
    %9 = arith.addf %7, %8 : vector<256x128xf32>
    %cst_5 = arith.constant 0.000000e+00 : f32
    %10 = vector.broadcast %cst_5 : f32 to vector<256x128xf32>
    %11 = arith.maximumf %9, %10 : vector<256x128xf32>
    %c0_6 = arith.constant 0 : index
    %c0_7 = arith.constant 0 : index
    %12 = vector.load %arg3[%c0_6, %c0_7] : memref<256x256xbf16, #tpu.memory_space<vmem>>, vector<256x256xbf16>
    %13 = arith.truncf %11 : vector<256x128xf32> to vector<256x128xbf16>
    %cst_8 = arith.constant dense<0.000000e+00> : vector<256x128xf32>
    %14 = tpu.matmul %12, %13, %cst_8 {dimension_numbers = #tpu.dot_dimension_numbers<[1], [0], [0], [1], [0, 0, 1, 1], [], []>} : vector<256x256xbf16>, vector<256x128xbf16>, vector<256x128xf32> -> vector<256x128xf32>
    %15 = vector.broadcast %2 : vector<256x1xf32> to vector<256x128xf32>
    %16 = arith.addf %14, %15 : vector<256x128xf32>
    %cst_9 = arith.constant 0.000000e+00 : f32
    %17 = vector.broadcast %cst_9 : f32 to vector<256x128xf32>
    %18 = arith.maximumf %16, %17 : vector<256x128xf32>
    %19 = vector.broadcast %3 : vector<256x1xf32> to vector<256x128xf32>
    %20 = arith.mulf %18, %19 : vector<256x128xf32>
    %cst_10 = arith.constant dense<0.000000e+00> : vector<128xf32>
    %21 = vector.multi_reduction <add>, %20, %cst_10 [0] : vector<256x128xf32> to vector<128xf32>
    %22 = vector.shape_cast %21 : vector<128xf32> to vector<1x128xf32>
    %23 = vector.broadcast %4 : vector<1x1xf32> to vector<1x128xf32>
    %24 = arith.addf %22, %23 : vector<1x128xf32>
    %c0_11 = arith.constant 0 : index
    %c0_12 = arith.constant 0 : index
    %25 = vector.load %arg5[%c0_11, %c0_12] : memref<1x128xf32, #tpu.memory_space<vmem>>, vector<1x128xf32>
    tpu.vector_store %arg5[%c0_11, %c0_12], %24 {strides = array<i32>} : memref<1x128xf32, #tpu.memory_space<vmem>>, vector<1x128xf32>,
    return
  }
  func.func @transform_0(%arg0: i32) -> (i32, i32) {
    %c0_i32 = arith.constant 0 : i32
    %c0_i32_0 = arith.constant 0 : i32
    return %c0_i32, %arg0 : i32, i32
  }
  func.func @transform_1(%arg0: i32) -> (i32, i32) {
    %c0_i32 = arith.constant 0 : i32
    %c0_i32_0 = arith.constant 0 : i32
    %c0_i32_1 = arith.constant 0 : i32
    return %c0_i32, %c0_i32_0 : i32, i32
  }
  func.func @transform_2(%arg0: i32) -> (i32, i32) {
    %c0_i32 = arith.constant 0 : i32
    %c0_i32_0 = arith.constant 0 : i32
    %c0_i32_1 = arith.constant 0 : i32
    return %c0_i32, %c0_i32_0 : i32, i32
  }
  func.func @transform_3(%arg0: i32) -> (i32, i32) {
    %c0_i32 = arith.constant 0 : i32
    %c0_i32_0 = arith.constant 0 : i32
    %c0_i32_1 = arith.constant 0 : i32
    return %c0_i32, %c0_i32_0 : i32, i32
  }
  func.func @transform_4(%arg0: i32) -> (i32, i32) {
    %c0_i32 = arith.constant 0 : i32
    %c0_i32_0 = arith.constant 0 : i32
    return %c0_i32, %arg0 : i32, i32
  }
}

</mosaic_0001>

<bundles_post_ra>
// kernel: q_forward.1
= control target key start
LH: loop header
LB: loop body
LE: loop exit
PB: predicated region body
PF: predicated region fallthrough
CT: control target
= control target key end

     0   :  { %v1570_v1 = vmov 0   ;;  %vm391_vm0 = vcmask 1043456   ;;  %vm342_vm1 = vcmask 326656   ;;  %s2330_s0 = inlined_call_operand.vmem [shape: bf16[40,128], index: 0, kind: input, shape index: {}]   ;;  %s2331_s3 = inlined_call_operand.vmem [shape: f32[256,4], index: 3, kind: input, shape index: {}]   ;;  %s2332_s1 = inlined_call_operand.vmem [shape: bf16[256,40], index: 1, kind: input, shape index: {}]   ;;  %s2333_s2 = inlined_call_operand.vmem [shape: bf16[256,256], index: 2, kind: input, shape index: {}]   ;;  %s2334_s4 = inlined_call_operand.vmem [shape: f32[1,128], index: 4, kind: output, shape index: {}]  }
   0x1   :  { %v86_v0 = vld [vmem:[%s2330_s0 + $0x10] sm:$0xf]  ;;  %1558 = vset.pattern.permute.xlu0 %v1570_v1  ;;  %1559 = vset.pattern.permute.xlu1 %v1570_v1  ;;  %v1605_v3 = vld [vmem:[%s2331_s3] sm:$0xff]  ;;  %v1502_v7 = vld [vmem:[%s2330_s0 + $0x8] sm:$0xff] }
   0x2   :  { %v336_v2 = vunpack.c.l.b16 %v86_v0  ;;  %1560 = vset.pattern.permute.xlu2 %v1570_v1  ;;  %89 = vperm.xlu0 %1558, %v1605_v3   ;;  %v1611_v4 = vld [vmem:[%s2331_s3 + $0x10] sm:$0xff]  ;;  %v1620_v8 = vld [vmem:[%s2331_s3 + $0x8] sm:$0xff]  ;;  %v1501_v9 = vld [vmem:[%s2330_s0] sm:$0xff] }
   0x3   :  { %99 = vperm.xlu1 %1559, %v1611_v4   ;;  %v1485_v10 = vld [vmem:[%s2332_s1] sm:$0xff]  ;;  %v1633_v11 = vld [vmem:[%s2331_s3 + $0x18] sm:$0xff]  ;;  %v1486_v12 = vld [vmem:[%s2332_s1 + $0x8] sm:$0xff] }
   0x4   :  { %v339_v5 = vpack.c.b16 %v336_v2, %v336_v2  ;;  %v1643_v13 = vld [vmem:[%s2331_s3 + $0x30] sm:$0xff]  ;;  %v1498_v14 = vld [vmem:[%s2332_s1 + $0x68] sm:$0xff]  ;;  %v1651_v15 = vld [vmem:[%s2331_s3 + $0x38] sm:$0xff] }
   0x5   :  { %v1487_v16 = vld [vmem:[%s2332_s1 + $0x10] sm:$0xff]  ;;  %v1663_v17 = vld [vmem:[%s2331_s3 + $0x20] sm:$0xff]  ;;  %v1673_v19 = vld [vmem:[%s2331_s3 + $0x48] sm:$0xff] }
   0x6   :  { %v393_v6 = vsel %vm391_vm0, %v339_v5, 0  ;;  %v1668_v18 = vld [vmem:[%s2331_s3 + $0x50] sm:$0xff]  ;;  %109 = vperm.xlu2 %1560, %v1663_v17   ;;  %v1685_v21 = vld [vmem:[%s2331_s3 + $0x28] sm:$0xff]  ;;  %v1695_v23 = vld [vmem:[%s2331_s3 + $0x60] sm:$0xff] }
   0x7   :  { %400 = vmatpush.bf16.msra.mxu0 %v393_v6  ;;  %1535 = vmatpush.bf16.msra.mxu3 %v393_v6  ;;  %v1499_v20 = vld [vmem:[%s2332_s1 + $0x70] sm:$0xff]  ;;  %v1690_v22 = vld [vmem:[%s2331_s3 + $0x68] sm:$0xff]  ;;  %v1488_v24 = vld [vmem:[%s2332_s1 + $0x18] sm:$0xff] }
   0x8   :  { %v1707_v25 = vld [vmem:[%s2331_s3 + $0x80] sm:$0xff]  ;;  %v1712_v26 = vld [vmem:[%s2331_s3 + $0x78] sm:$0xff]  ;;  %v1734_v30 = vld [vmem:[%s2331_s3 + $0x90] sm:$0xff] }
   0x9   :  { %v1717_v27 = vld [vmem:[%s2331_s3 + $0x40] sm:$0xff]  ;;  %v1500_v28 = vld [vmem:[%s2332_s1 + $0x78] sm:$0xff]  ;;  %v1750_v33 = vld [vmem:[%s2331_s3 + $0xb0] sm:$0xff] }
   0xa   :  { %94 = vperm.xlu0 %1558, %v1620_v8   ;;  %v1729_v29 = vld [vmem:[%s2331_s3 + $0x98] sm:$0xff]  ;;  %v1489_v31 = vld [vmem:[%s2332_s1 + $0x20] sm:$0xff]  ;;  %v1755_v34 = vld [vmem:[%s2331_s3 + $0xa8] sm:$0xff] }
   0xb   :  { %401 = vmatpush.bf16.msra.mxu0 %v1502_v7  ;;  %1536 = vmatpush.bf16.msra.mxu3 %v1502_v7  ;;  %v1745_v32 = vld [vmem:[%s2331_s3 + $0x58] sm:$0xff]  ;;  %v1763_v35 = vld [vmem:[%s2331_s3 + $0x70] sm:$0xff]  ;;  %v1768_v36 = vld [vmem:[%s2331_s3 + $0xc8] sm:$0xff] }
   0xc   :  { %104 = vperm.xlu1 %1559, %v1633_v11   ;;  %v1773_v37 = vld [vmem:[%s2331_s3 + $0xc0] sm:$0xff]  ;;  %v1490_v38 = vld [vmem:[%s2332_s1 + $0x28] sm:$0xff]  ;;  %v1795_v41 = vld [vmem:[%s2331_s3 + $0xf8] sm:$0xff] }
   0xd   :  { %v1785_v39 = vld [vmem:[%s2331_s3 + $0x88] sm:$0xff]  ;;  %v1790_v40 = vld [vmem:[%s2331_s3 + $0xe0] sm:$0xff]  ;;  %2350 = vst [vmem:[#allocation3_spill] sm:$0xff] %v1795_v41  ;;  %v1491_v43 = vld [vmem:[%s2332_s1 + $0x30] sm:$0xff] }
   0xe   :  { %114 = vperm.xlu2 %1560, %v1685_v21   ;;  %2349 = vst [vmem:[#allocation2_spill] sm:$0xff] %v1790_v40  ;;  %v1803_v42 = vld [vmem:[%s2331_s3 + $0xa0] sm:$0xff]  ;;  %v1812_v44 = vld [vmem:[%s2331_s3 + $0xd8] sm:$0xff]  ;;  %v1817_v45 = vld [vmem:[%s2331_s3 + $0xd0] sm:$0xff] }
   0xf   :  { %402 = vmatpush.bf16.msra.mxu0 %v1501_v9  ;;  %1537 = vmatpush.bf16.msra.mxu3 %v1501_v9  ;;  %2351 = vst [vmem:[#allocation4_spill] sm:$0xff] %v1812_v44  ;;  %v1825_v46 = vld [vmem:[%s2331_s3 + $0xb8] sm:$0xff]  ;;  %v1831_v47 = vld [vmem:[%s2331_s3 + $0xf0] sm:$0xff]  ;;  %v1841_v49 = vld [vmem:[%s2331_s3 + $0xe8] sm:$0xff] }
  0x10   :  { %2352 = vst [vmem:[#allocation5_spill] sm:$0xff] %v1817_v45  ;;  %v1492_v48 = vld [vmem:[%s2332_s1 + $0x38] sm:$0xff]  ;;  %v1493_v51 = vld [vmem:[%s2332_s1 + $0x40] sm:$0xff]  ;;  %v1494_v0 = vld [vmem:[%s2332_s1 + $0x48] sm:$0xff] }
  0x11   :  { %2353 = vst [vmem:[#allocation6_spill] sm:$0xff] %v1825_v46 }
  0x12   :  { %1341 = vmatmul.msk.bf16.vlgmr.msra.gmra.mxu0 %vm342_vm1, %v1485_v10  ;;  %119 = vperm.xlu0 %1558, %v1643_v13   ;;  %2354 = vst [vmem:[#allocation7_spill] sm:$0xff] %v1831_v47 }
  0x13   :  { %1354 = vmatmul.msk.bf16.vlgmr.msra.gmra.mxu3 %vm342_vm1, %v1498_v14  ;;  %2355 = vst [vmem:[#allocation8_spill] sm:$0xff] %v1841_v49 }
  0x14   :  { %124 = vperm.xlu1 %1559, %v1651_v15  }
  0x16   :  { %129 = vperm.xlu2 %1560, %v1717_v27  }
  0x1a   :  { %134 = vperm.xlu0 %1558, %v1673_v19  }
  0x1c   :  { %139 = vperm.xlu1 %1559, %v1668_v18  }
  0x1e   :  { %144 = vperm.xlu2 %1560, %v1745_v32  }
  0x22   :  { %1342 = vmatmul.msk.bf16.gmra.mxu0 %vm342_vm1, %v1486_v12  ;;  %149 = vperm.xlu0 %1558, %v1695_v23  }
  0x23   :  { %1355 = vmatmul.msk.bf16.gmra.mxu3 %vm342_vm1, %v1499_v20 }
  0x24   :  { %154 = vperm.xlu1 %1559, %v1690_v22  }
  0x26   :  { %159 = vperm.xlu2 %1560, %v1763_v35  }
  0x2a   :  { %164 = vperm.xlu0 %1558, %v1712_v26  }
  0x2c   :  { %169 = vperm.xlu1 %1559, %v1707_v25  }
  0x2e   :  { %174 = vperm.xlu2 %1560, %v1785_v39  }
  0x32   :  { %1343 = vmatmul.msk.bf16.gmra.mxu0 %vm342_vm1, %v1487_v16  ;;  %179 = vperm.xlu0 %1558, %v1734_v30  }
  0x33   :  { %1356 = vmatmul.msk.bf16.gmra.mxu3 %vm342_vm1, %v1500_v28 }
  0x34   :  { %184 = vperm.xlu1 %1559, %v1729_v29  }
  0x36   :  { %189 = vperm.xlu2 %1560, %v1803_v42  }
  0x3a   :  { %194 = vperm.xlu0 %1558, %v1755_v34  }
  0x3c   :  { %199 = vperm.xlu1 %1559, %v1750_v33  }
  0x3e   :  { %204 = vperm.xlu2 %1560, %v1825_v46  }
  0x42   :  { %1344 = vmatmul.msk.bf16.gmra.mxu0 %vm342_vm1, %v1488_v24  ;;  %209 = vperm.xlu0 %1558, %v1773_v37  }
  0x44   :  { %214 = vperm.xlu1 %1559, %v1768_v36  }
  0x46   :  { %239 = vperm.xlu2 %1560, %v1831_v47  }
  0x4a   :  { %244 = vperm.xlu0 %1558, %v1795_v41  }
  0x4c   :  { %229 = vperm.xlu1 %1559, %v1790_v40  }
  0x4e   :  { %234 = vperm.xlu2 %1560, %v1841_v49  }
  0x52   :  { %1345 = vmatmul.msk.bf16.gmra.mxu0 %vm342_vm1, %v1489_v31  ;;  %219 = vperm.xlu0 %1558, %v1817_v45   ;;  %v1495_v31 = vld [vmem:[%s2332_s1 + $0x50] sm:$0xff] }
  0x54   :  { %224 = vperm.xlu1 %1559, %v1812_v44  }
  0x60   :  { %v110_v55 = vpop.permute.xlu2 %109 }
  0x62   :  { %1346 = vmatmul.msk.bf16.gmra.mxu0 %vm342_vm1, %v1490_v38 }
  0x68   :  { %v115_v62 = vpop.permute.xlu2 %114 }
  0x70   :  { %v130_v7 = vpop.permute.xlu2 %129 }
  0x72   :  { %1347 = vmatmul.msk.bf16.gmra.mxu0 %vm342_vm1, %v1491_v43 }
  0x74   :  { %v90_v50 = vpop.permute.xlu0 %89 }
  0x75   :  { %v100_v54 = vpop.permute.xlu1 %99 }
  0x78   :  { %v1858_v28 = vpop.permute.xlu2 %144 }
  0x7c   :  { %v95_v56 = vpop.permute.xlu0 %94 }
  0x7e   :  { %v105_v61 = vpop.permute.xlu1 %104 }
  0x82   :  { %1348 = vmatmul.msk.bf16.gmra.mxu0 %vm342_vm1, %v1492_v48 }
  0x84   :  { %v120_v5 = vpop.permute.xlu0 %119 }
  0x86   :  { %v125_v6 = vpop.permute.xlu1 %124 }
  0x8c   :  { %v135_v20 = vpop.permute.xlu0 %134 }
  0x8e   :  { %v1854_v16 = vpop.permute.xlu1 %139 }
  0x8f   :  { %v404_v52 = vpop.f32.mrf.mxu0 }
  0x90   :  { %v405_v53 = vadd.f32 %v404_v52, %v90_v50  ;;  %v1868_v52 = vpop.permute.xlu2 %159 }
  0x92   :  { %1349 = vmatmul.msk.bf16.gmra.mxu0 %vm342_vm1, %v1493_v51  ;;  %v484_v59 = vmax.f32 %v405_v53, 0.0 }
  0x94   :  { %v1866_v50 = vpop.permute.xlu0 %149 }
  0x96   :  { %v1864_v48 = vpop.permute.xlu1 %154  ;;  %v469_v51 = vpop.f32.mrf.mxu3 }
  0x97   :  { %v406_v57 = vpop.f32.mrf.mxu0 }
  0x98   :  { %v407_v58 = vadd.f32 %v406_v57, %v95_v56 }
  0x9a   :  { %v485_v60 = vmax.f32 %v407_v58, 0.0 }
  0x9c   :  { %v1848_v63 = vpack.c.bf16 %v485_v60, %v484_v59  ;;  %v1872_v59 = vpop.permute.xlu0 %164 }
  0x9e   :  { %v1870_v58 = vpop.permute.xlu1 %169  ;;  %v471_v60 = vpop.f32.mrf.mxu3 }
  0x9f   :  { %v409_v1 = vpop.f32.mrf.mxu0 }
  0xa0   :  { %v410_v2 = vadd.f32 %v409_v1, %v100_v54 }
  0xa2   :  { %1350 = vmatmul.msk.bf16.gmra.mxu0 %vm342_vm1, %v1494_v0  ;;  %v486_v12 = vmax.f32 %v410_v2, 0.0  ;;  %v1496_v0 = vld [vmem:[%s2332_s1 + $0x58] sm:$0xff] }
  0xa7   :  { %v411_v9 = vpop.f32.mrf.mxu0 }
  0xa8   :  { %v412_v10 = vadd.f32 %v411_v9, %v105_v61  ;;  %v1884_v9 = vpop.permute.xlu0 %179 }
  0xa9   :  { %2357 = vst [vmem:[#allocation10_spill] sm:$0xff] %v1884_v9 }
  0xaa   :  { %v487_v14 = vmax.f32 %v412_v10, 0.0  ;;  %v474_v10 = vpop.f32.mrf.mxu3 }
  0xac   :  { %v1856_v24 = vpack.c.bf16 %v487_v14, %v486_v12 }
  0xaf   :  { %v414_v38 = vpop.f32.mrf.mxu0 }
  0xb0   :  { %v415_v43 = vadd.f32 %v414_v38, %v110_v55  ;;  %v1876_v55 = vpop.permute.xlu2 %174 }
  0xb2   :  { %1351 = vmatmul.msk.bf16.gmra.mxu0 %vm342_vm1, %v1495_v31  ;;  %v488_v56 = vmax.f32 %v415_v43, 0.0 }
  0xb7   :  { %v416_v53 = vpop.f32.mrf.mxu0 }
  0xb8   :  { %v417_v54 = vadd.f32 %v416_v53, %v115_v62  ;;  %v1882_v62 = vpop.permute.xlu1 %184  ;;  %v1886_v12 = vpop.permute.xlu2 %189 }
  0xb9   :  { %2356 = vst [vmem:[#allocation9_spill] sm:$0xff] %v1882_v62 }
  0xba   :  { %v489_v57 = vmax.f32 %v417_v54, 0.0  ;;  %2358 = vst [vmem:[#allocation11_spill] sm:$0xff] %v1886_v12  ;;  %v1890_v54 = vpop.permute.xlu0 %194 }
  0xbb   :  { %2360 = vst [vmem:[#allocation13_spill] sm:$0xff] %v1890_v54 }
  0xbc   :  { %v1874_v61 = vpack.c.bf16 %v489_v57, %v488_v56  ;;  %v476_v56 = vpop.f32.mrf.mxu3 }
  0xbf   :  { %v419_v1 = vpop.f32.mrf.mxu0 }
  0xc0   :  { %v420_v2 = vadd.f32 %v419_v1, %v120_v5  ;;  %v1888_v53 = vpop.permute.xlu1 %199  ;;  %v1894_v5 = vpop.permute.xlu2 %204 }
  0xc1   :  { %2359 = vst [vmem:[#allocation12_spill] sm:$0xff] %v1888_v53 }
  0xc2   :  { %1352 = vmatmul.msk.bf16.gmra.mxu0 %vm342_vm1, %v1496_v0  ;;  %v490_v38 = vmax.f32 %v420_v2, 0.0  ;;  %2361 = vst [vmem:[#allocation14_spill] sm:$0xff] %v1894_v5  ;;  %v1497_v0 = vld [vmem:[%s2332_s1 + $0x60] sm:$0xff]  ;;  %v1902_v2 = vpop.permute.xlu0 %209 }
  0xc3   :  { %2363 = vst [vmem:[#allocation16_spill] sm:$0xff] %v1902_v2 }
  0xc7   :  { %v421_v14 = vpop.f32.mrf.mxu0 }
  0xc8   :  { %v422_v31 = vadd.f32 %v421_v14, %v125_v6  ;;  %v1900_v6 = vpop.permute.xlu1 %214  ;;  %v479_v14 = vpop.f32.mrf.mxu3 }
  0xc9   :  { %2362 = vst [vmem:[#allocation15_spill] sm:$0xff] %v1900_v6 }
  0xca   :  { %v491_v43 = vmax.f32 %v422_v31, 0.0  ;;  %v240_v31 = vpop.permute.xlu2 %239  ;;  %v245_v5 = vpop.permute.xlu0 %244 }
  0xcc   :  { %v1892_v57 = vpack.c.bf16 %v491_v43, %v490_v38  ;;  %v480_v38 = vadd.f32 %v479_v14, %v240_v31 }
  0xce   :  { %v514_v47 = vmax.f32 %v480_v38, 0.0 }
  0xcf   :  { %v424_v1 = vpop.f32.mrf.mxu0 }
  0xd0   :  { %v425_v9 = vadd.f32 %v424_v1, %v130_v7  ;;  %v230_v53 = vpop.permute.xlu1 %229  ;;  %v481_v41 = vpop.f32.mrf.mxu3 }
  0xd1   :  { %v475_v49 = vadd.f32 %v474_v10, %v230_v53  ;;  %v482_v45 = vadd.f32 %v481_v41, %v245_v5 }
  0xd2   :  { %1353 = vmatmul.msk.bf16.gmra.mxu0 %vm342_vm1, %v1497_v0  ;;  %v492_v43 = vmax.f32 %v425_v9, 0.0  ;;  %v235_v0 = vpop.permute.xlu2 %234  ;;  %v220_v9 = vpop.permute.xlu0 %219 }
  0xd3   :  { %v512_v1 = vmax.f32 %v475_v49, 0.0  ;;  %v515_v6 = vmax.f32 %v482_v45, 0.0  ;;  %v477_v40 = vadd.f32 %v476_v56, %v235_v0 }
  0xd5   :  { %v513_v44 = vmax.f32 %v477_v40, 0.0  ;;  %v1906_v46 = vpack.c.bf16 %v515_v6, %v514_v47  ;;  %v1571_v47 = vmov 1  }
  0xd6   :  { %1563 = vset.pattern.permute.xlu1 %v1571_v47  ;;  %1561 = vset.pattern.permute.xlu2 %v1571_v47 }
  0xd7   :  { %v426_v62 = vpop.f32.mrf.mxu0  ;;  %941 = vmatpush.bf16.msra.mxu2 %v1906_v46  ;;  %573 = vperm.xlu1 %1563, %v1611_v4  }
  0xd8   :  { %v427_v12 = vadd.f32 %v426_v62, %v135_v20  ;;  %v1909_v20 = vpack.c.bf16 %v513_v44, %v512_v1  ;;  %v225_v62 = vpop.permute.xlu1 %224  ;;  %565 = vperm.xlu2 %1561, %v1605_v3   ;;  %1562 = vset.pattern.permute.xlu0 %v1571_v47 }
  0xd9   :  { %v472_v10 = vadd.f32 %v471_v60, %v225_v62  ;;  %569 = vperm.xlu0 %1562, %v1620_v8  }
  0xda   :  { %v493_v54 = vmax.f32 %v427_v12, 0.0  ;;  %v470_v12 = vadd.f32 %v469_v51, %v220_v9 }
  0xdb   :  { %v511_v53 = vmax.f32 %v472_v10, 0.0  ;;  %942 = vmatpush.bf16.msra.mxu2 %v1909_v20 }
  0xdc   :  { %v1904_v7 = vpack.c.bf16 %v493_v54, %v492_v43  ;;  %v510_v54 = vmax.f32 %v470_v12, 0.0 }
  0xde   :  { %v1914_v40 = vpack.c.bf16 %v511_v53, %v510_v54 }
  0xdf   :  { %v429_v2 = vpop.f32.mrf.mxu0  ;;  %581 = vperm.xlu1 %1563, %v1663_v17  }
  0xe0   :  { %v430_v41 = vadd.f32 %v429_v2, %v1854_v16  ;;  %943 = vmatpush.bf16.msra.mxu2 %v1914_v40  ;;  %577 = vperm.xlu2 %1561, %v1633_v11  }
  0xe1   :  { %589 = vperm.xlu0 %1562, %v1643_v13  }
  0xe2   :  { %v494_v44 = vmax.f32 %v430_v41, 0.0 }
  0xe7   :  { %v431_v45 = vpop.f32.mrf.mxu0  ;;  %593 = vperm.xlu1 %1563, %v1651_v15  }
  0xe8   :  { %v432_v49 = vadd.f32 %v431_v45, %v1858_v28  ;;  %585 = vperm.xlu2 %1561, %v1685_v21  }
  0xe9   :  { %601 = vperm.xlu0 %1562, %v1673_v19  }
  0xea   :  { %v495_v56 = vmax.f32 %v432_v49, 0.0  ;;  %v2365_v49 = vld [vmem:[#allocation4_spill] sm:$0xff] }
  0xec   :  { %v553_v16 = vpack.c.bf16 %v495_v56, %v494_v44  ;;  %v2366_v44 = vld [vmem:[#allocation2_spill] sm:$0xff]  ;;  %v2367_v56 = vld [vmem:[#allocation5_spill] sm:$0xff] }
  0xef   :  { %v434_v51 = vpop.f32.mrf.mxu0  ;;  %605 = vperm.xlu1 %1563, %v1668_v18  }
  0xf0   :  { %v435_v28 = vadd.f32 %v434_v51, %v1866_v50  ;;  %597 = vperm.xlu2 %1561, %v1717_v27  }
  0xf1   :  { %613 = vperm.xlu0 %1562, %v1695_v23  }
  0xf2   :  { %v496_v6 = vmax.f32 %v435_v28, 0.0 }
  0xf7   :  { %v436_v60 = vpop.f32.mrf.mxu0  ;;  %617 = vperm.xlu1 %1563, %v1690_v22  }
  0xf8   :  { %v437_v5 = vadd.f32 %v436_v60, %v1864_v48  ;;  %609 = vperm.xlu2 %1561, %v1745_v32  }
  0xf9   :  { %625 = vperm.xlu0 %1562, %v1712_v26  }
  0xfa   :  { %v497_v2 = vmax.f32 %v437_v5, 0.0  ;;  %v2369_v5 = vld [vmem:[#allocation3_spill] sm:$0xff] }
  0xfc   :  { %v554_v14 = vpack.c.bf16 %v497_v2, %v496_v6  ;;  %v2370_v6 = vld [vmem:[#allocation8_spill] sm:$0xff] }
  0xff   :  { %v439_v31 = vpop.f32.mrf.mxu0  ;;  %629 = vperm.xlu1 %1563, %v1707_v25  }
 0x100   :  { %v440_v50 = vadd.f32 %v439_v31, %v1868_v52  ;;  %621 = vperm.xlu2 %1561, %v1763_v35   ;;  %v1375_v31 = vld [vmem:[%s2333_s2 + $0x20] sm:$0xf] }
 0x101   :  { %637 = vperm.xlu0 %1562, %v1734_v30  }
 0x102   :  { %v498_v43 = vmax.f32 %v440_v50, 0.0  ;;  %v1508_v50 = vld [vmem:[%s2333_s2 + $0x24] sm:$0xf0] }
 0x107   :  { %v441_v38 = vpop.f32.mrf.mxu0  ;;  %641 = vperm.xlu1 %1563, %v1729_v29  }
 0x108   :  { %v442_v48 = vadd.f32 %v441_v38, %v1872_v59  ;;  %633 = vperm.xlu2 %1561, %v1785_v39   ;;  %v1471_v38 = vld [vmem:[%s2333_s2 + $0xe0] sm:$0xf] }
 0x109   :  { %649 = vperm.xlu0 %1562, %v1755_v34  }
 0x10a   :  { %v499_v0 = vmax.f32 %v442_v48, 0.0  ;;  %v1376_v48 = vor.u32 %v1508_v50, %v1375_v31 }
 0x10c   :  { %v555_v1 = vpack.c.bf16 %v499_v0, %v498_v43  ;;  %v1383_v0 = vld [vmem:[%s2333_s2 + $0x30] sm:$0xf] }
 0x10e   :  { %852 = vmatpush.bf16.msra.mxu1 %v555_v1  ;;  %1538 = vmatpush.bf16.msrb.mxu3 %v555_v1  ;;  %v2371_v1 = vld [vmem:[#allocation16_spill] sm:$0xff] }
 0x10f   :  { %v444_v62 = vpop.f32.mrf.mxu0  ;;  %653 = vperm.xlu1 %1563, %v1750_v33  }
 0x110   :  { %v445_v52 = vadd.f32 %v444_v62, %v1870_v58  ;;  %645 = vperm.xlu2 %1561, %v1803_v42  }
 0x111   :  { %661 = vperm.xlu0 %1562, %v1773_v37  }
 0x112   :  { %853 = vmatpush.bf16.msra.mxu1 %v554_v14  ;;  %1539 = vmatpush.bf16.msrb.mxu3 %v554_v14  ;;  %v500_v10 = vmax.f32 %v445_v52, 0.0  ;;  %v1572_v14 = vmov 2  }
 0x116   :  { %854 = vmatpush.bf16.msra.mxu1 %v553_v16  ;;  %1540 = vmatpush.bf16.msrb.mxu3 %v553_v16  ;;  %v1506_v16 = vld [vmem:[%s2333_s2 + $0x14] sm:$0xf0] }
 0x117   :  { %v446_v59 = vpop.f32.mrf.mxu0  ;;  %665 = vperm.xlu1 %1563, %v1768_v36  }
 0x118   :  { %v447_v9 = vadd.f32 %v446_v59, %v1876_v55  ;;  %v1359_v55 = vld [vmem:[%s2333_s2] sm:$0xf]  ;;  %v2373_v59 = vld [vmem:[#allocation15_spill] sm:$0xff] }
 0x119   :  { %673 = vperm.xlu0 %1562, %v2365_v49  }
 0x11a   :  { %v501_v12 = vmax.f32 %v447_v9, 0.0  ;;  %855 = vmatpush.bf16.msra.mxu1 %v1904_v7  ;;  %1541 = vmatpush.bf16.msrb.mxu3 %v1904_v7  ;;  %v1528_v7 = vld [vmem:[%s2333_s2 + $0xc4] sm:$0xf0] }
 0x11c   :  { %v1946_v41 = vpack.c.bf16 %v501_v12, %v500_v10 }
 0x11e   :  { %856 = vmatpush.bf16.msra.mxu1 %v1892_v57  ;;  %1542 = vmatpush.bf16.msrb.mxu3 %v1892_v57  ;;  %v1504_v57 = vld [vmem:[%s2333_s2 + $0x4] sm:$0xf0] }
 0x11f   :  { %v1950_v58 = vpop.f32.mrf.mxu0  ;;  %v1360_v54 = vor.u32 %v1504_v57, %v1359_v55  ;;  %677 = vperm.xlu1 %1563, %v2366_v44   ;;  %v2374_v55 = vld [vmem:[#allocation12_spill] sm:$0xff] }
 0x122   :  { %857 = vmatpush.bf16.msra.mxu1 %v1874_v61  ;;  %1543 = vmatpush.bf16.msrb.mxu3 %v1874_v61  ;;  %v1455_v61 = vld [vmem:[%s2333_s2 + $0xc0] sm:$0xf] }
 0x123   :  { %v1456_v45 = vor.u32 %v1528_v7, %v1455_v61 }
 0x126   :  { %858 = vmatpush.bf16.msra.mxu1 %v1856_v24  ;;  %1544 = vmatpush.bf16.msrb.mxu3 %v1856_v24  ;;  %v2364_v24 = vld [vmem:[#allocation6_spill] sm:$0xff] }
 0x127   :  { %v1971_v53 = vpop.f32.mrf.mxu0  ;;  %657 = vperm.xlu2 %1561, %v2364_v24   ;;  %689 = vperm.xlu1 %1563, %v2369_v5  }
 0x12a   :  { %859 = vmatpush.bf16.msra.mxu1 %v1848_v63  ;;  %1545 = vmatpush.bf16.msrb.mxu3 %v1848_v63  ;;  %v2368_v63 = vld [vmem:[#allocation7_spill] sm:$0xff] }
 0x12b   :  { %685 = vperm.xlu0 %1562, %v2368_v63  }
 0x12d   :  { %860 = vmatmul.bf16.vlgmr.msra.gmra.mxu1 %v1360_v54  ;;  %920 = vmatmul.bf16.vlgmr.msrb.gmra.mxu3 %v1456_v45  ;;  %v2375_v54 = vld [vmem:[#allocation13_spill] sm:$0xff] }
 0x12e   :  { %1546 = vmatpush.bf16.msra.mxu3 %v1906_v46  ;;  %v1367_v46 = vld [vmem:[%s2333_s2 + $0x10] sm:$0xf] }
 0x12f   :  { %v454_v47 = vpop.f32.mrf.mxu0  ;;  %669 = vperm.xlu2 %1561, %v2367_v56   ;;  %v1368_v28 = vor.u32 %v1506_v16, %v1367_v46  ;;  %1566 = vset.pattern.permute.xlu1 %v1572_v14 }
 0x130   :  { %1071 = vperm.xlu1 %1566, %v1611_v4  }
 0x132   :  { %1547 = vmatpush.bf16.msra.mxu3 %v1909_v20  ;;  %v1463_v20 = vld [vmem:[%s2333_s2 + $0xd0] sm:$0xf] }
 0x133   :  { %1565 = vset.pattern.permute.xlu0 %v1572_v14 }
 0x134   :  { %1067 = vperm.xlu0 %1565, %v1620_v8   ;;  %v1532_v8 = vld [vmem:[%s2333_s2 + $0xe4] sm:$0xf0] }
 0x135   :  { %v1472_v43 = vor.u32 %v1532_v8, %v1471_v38  ;;  %v1503_v8 = vld [vmem:[%s2333_s2 + $0x4] sm:$0xf] }
 0x136   :  { %1548 = vmatpush.bf16.msra.mxu3 %v1914_v40  ;;  %v1530_v40 = vld [vmem:[%s2333_s2 + $0xd4] sm:$0xf0] }
 0x137   :  { %v456_v51 = vpop.f32.mrf.mxu0  ;;  %v1464_v60 = vor.u32 %v1530_v40, %v1463_v20  ;;  %681 = vperm.xlu2 %1561, %v2370_v6  }
 0x138   :  { %1079 = vperm.xlu1 %1566, %v1663_v17   ;;  %v1479_v17 = vld [vmem:[%s2333_s2 + $0xf0] sm:$0xf]  ;;  %v457_v45 = vadd.f32 %v456_v51, %v2375_v54  ;;  %v2378_v51 = vld [vmem:[#allocation10_spill] sm:$0xff] }
 0x139   :  { %v1415_v54 = vld [vmem:[%s2333_s2 + $0x70] sm:$0xf] }
 0x13c   :  { %1087 = vperm.xlu0 %1565, %v1643_v13   ;;  %v1510_v13 = vld [vmem:[%s2333_s2 + $0x34] sm:$0xf0] }
 0x13d   :  { %865 = vmatmul.bf16.gmra.mxu1 %v1368_v28  ;;  %925 = vmatmul.bf16.gmra.mxu3 %v1464_v60  ;;  %v1384_v10 = vor.u32 %v1510_v13, %v1383_v0  ;;  %v505_v60 = vmax.f32 %v457_v45, 0.0  ;;  %v1529_v13 = vld [vmem:[%s2333_s2 + $0xd4] sm:$0xf] }
 0x13f   :  { %v459_v2 = vpop.f32.mrf.mxu0  ;;  %1564 = vset.pattern.permute.xlu2 %v1572_v14  ;;  %v450_v14 = vadd.f32 %v1950_v58, %v2378_v51  ;;  %v1520_v51 = vld [vmem:[%s2333_s2 + $0x84] sm:$0xf0] }
 0x140   :  { %1063 = vperm.xlu2 %1564, %v1605_v3   ;;  %1091 = vperm.xlu1 %1566, %v1651_v15   ;;  %v460_v57 = vadd.f32 %v459_v2, %v2374_v55 }
 0x141   :  { %v502_v50 = vmax.f32 %v450_v14, 0.0 }
 0x142   :  { %v506_v40 = vmax.f32 %v460_v57, 0.0 }
 0x144   :  { %1099 = vperm.xlu0 %1565, %v1673_v19   ;;  %v2372_v19 = vld [vmem:[#allocation14_spill] sm:$0xff] }
 0x147   :  { %v461_v4 = vpop.f32.mrf.mxu0 }
 0x148   :  { %1075 = vperm.xlu2 %1564, %v1633_v11   ;;  %v1534_v11 = vld [vmem:[%s2333_s2 + $0xf4] sm:$0xf0]  ;;  %v462_v52 = vadd.f32 %v461_v4, %v2372_v19  ;;  %1103 = vperm.xlu1 %1566, %v1668_v18   ;;  %v1361_v4 = vld [vmem:[%s2333_s2 + $0x8] sm:$0xf0] }
 0x149   :  { %v1480_v12 = vor.u32 %v1534_v11, %v1479_v17  ;;  %v2055_v38 = vpop.permute.xlu1 %573 }
 0x14a   :  { %v507_v46 = vmax.f32 %v462_v52, 0.0 }
 0x14b   :  { %v2077_v0 = vpop.permute.xlu0 %569 }
 0x14c   :  { %1111 = vperm.xlu0 %1565, %v1695_v23   ;;  %v2377_v23 = vld [vmem:[#allocation9_spill] sm:$0xff]  ;;  %v559_v2 = vpack.c.bf16 %v507_v46, %v506_v40  ;;  %v1509_v46 = vld [vmem:[%s2333_s2 + $0x34] sm:$0xf] }
 0x14d   :  { %870 = vmatmul.bf16.gmra.mxu1 %v1376_v48  ;;  %930 = vmatmul.bf16.gmra.mxu3 %v1472_v43  ;;  %v452_v28 = vadd.f32 %v1971_v53, %v2377_v23  ;;  %v2052_v53 = vpop.permute.xlu2 %565  ;;  %v1457_v48 = vld [vmem:[%s2333_s2 + $0xc8] sm:$0xf0] }
 0x14f   :  { %v464_v3 = vpop.f32.mrf.mxu0  ;;  %v503_v31 = vmax.f32 %v452_v28, 0.0 }
 0x150   :  { %v465_v62 = vadd.f32 %v464_v3, %v2371_v1  ;;  %1083 = vperm.xlu2 %1564, %v1685_v21   ;;  %v2376_v21 = vld [vmem:[#allocation11_spill] sm:$0xff]  ;;  %1115 = vperm.xlu1 %1566, %v1690_v22  }
 0x151   :  { %v455_v20 = vadd.f32 %v454_v47, %v2376_v21  ;;  %v557_v58 = vpack.c.bf16 %v503_v31, %v502_v50  ;;  %v2079_v1 = vpop.permute.xlu1 %581  ;;  %v1481_v21 = vld [vmem:[%s2333_s2 + $0xf8] sm:$0xf0]  ;;  %v1393_v50 = vld [vmem:[%s2333_s2 + $0x48] sm:$0xf0] }
 0x152   :  { %v508_v61 = vmax.f32 %v465_v62, 0.0 }
 0x153   :  { %v504_v18 = vmax.f32 %v455_v20, 0.0  ;;  %v2093_v62 = vpop.permute.xlu0 %589 }
 0x154   :  { %1123 = vperm.xlu0 %1565, %v1712_v26   ;;  %v1512_v26 = vld [vmem:[%s2333_s2 + $0x44] sm:$0xf0] }
 0x155   :  { %v558_v47 = vpack.c.bf16 %v505_v60, %v504_v18  ;;  %v2074_v3 = vpop.permute.xlu2 %577 }
 0x157   :  { %v466_v15 = vpop.f32.mrf.mxu0 }
 0x158   :  { %v467_v9 = vadd.f32 %v466_v15, %v2373_v59  ;;  %1095 = vperm.xlu2 %1564, %v1717_v27   ;;  %v1391_v27 = vld [vmem:[%s2333_s2 + $0x40] sm:$0xf]  ;;  %1127 = vperm.xlu1 %1566, %v1707_v25   ;;  %v1399_v25 = vld [vmem:[%s2333_s2 + $0x50] sm:$0xf] }
 0x159   :  { %v1392_v22 = vor.u32 %v1512_v26, %v1391_v27  ;;  %v2106_v17 = vpop.permute.xlu1 %593  ;;  %v1407_v59 = vld [vmem:[%s2333_s2 + $0x60] sm:$0xf] }
 0x15a   :  { %v509_v7 = vmax.f32 %v467_v9, 0.0 }
 0x15b   :  { %v2111_v19 = vpop.permute.xlu0 %601 }
 0x15c   :  { %v560_v16 = vpack.c.bf16 %v509_v7, %v508_v61  ;;  %1135 = vperm.xlu0 %1565, %v1734_v30   ;;  %v1364_v30 = vor.u32 %v1503_v8, %v1361_v4 }
 0x15d   :  { %875 = vmatmul.bf16.gmra.mxu1 %v1384_v10  ;;  %935 = vmatmul.bf16.gmra.mxu3 %v1480_v12  ;;  %v1531_v10 = vld [vmem:[%s2333_s2 + $0xe4] sm:$0xf]  ;;  %v1473_v12 = vld [vmem:[%s2333_s2 + $0xe8] sm:$0xf0] }
 0x15e   :  { %944 = vmatpush.bf16.msra.mxu2 %v560_v16  ;;  %1549 = vmatpush.bf16.msra.mxu3 %v560_v16  ;;  %v1476_v55 = vor.u32 %v1531_v10, %v1473_v12  ;;  %v1533_v16 = vld [vmem:[%s2333_s2 + $0xf4] sm:$0xf] }
 0x15f   :  { %v1484_v23 = vor.u32 %v1533_v16, %v1481_v21  ;;  %v1447_v16 = vld [vmem:[%s2333_s2 + $0xb0] sm:$0xf]  ;;  %v1526_v21 = vld [vmem:[%s2333_s2 + $0xb4] sm:$0xf0] }
 0x160   :  { %1107 = vperm.xlu2 %1564, %v1745_v32   ;;  %v1527_v32 = vld [vmem:[%s2333_s2 + $0xc4] sm:$0xf]  ;;  %1139 = vperm.xlu1 %1566, %v1729_v29   ;;  %v1369_v29 = vld [vmem:[%s2333_s2 + $0x18] sm:$0xf0] }
 0x161   :  { %v1460_v43 = vor.u32 %v1527_v32, %v1457_v48  ;;  %v2122_v9 = vpop.permute.xlu1 %605 }
 0x162   :  { %945 = vmatpush.bf16.msra.mxu2 %v559_v2  ;;  %1550 = vmatpush.bf16.msra.mxu3 %v559_v2  ;;  %v1423_v2 = vld [vmem:[%s2333_s2 + $0x80] sm:$0xf] }
 0x163   :  { %v1424_v18 = vor.u32 %v1520_v51, %v1423_v2  ;;  %v1448_v51 = vor.u32 %v1526_v21, %v1447_v16 }
 0x164   :  { %1147 = vperm.xlu0 %1565, %v1755_v34  }
 0x166   :  { %946 = vmatpush.bf16.msra.mxu2 %v558_v47  ;;  %1551 = vmatpush.bf16.msra.mxu3 %v558_v47  ;;  %v1511_v47 = vld [vmem:[%s2333_s2 + $0x44] sm:$0xf] }
 0x167   :  { %v1396_v26 = vor.u32 %v1511_v47, %v1393_v50  ;;  %v1417_v47 = vld [vmem:[%s2333_s2 + $0x78] sm:$0xf0] }
 0x168   :  { %1119 = vperm.xlu2 %1564, %v1763_v35   ;;  %v1514_v35 = vld [vmem:[%s2333_s2 + $0x54] sm:$0xf0]  ;;  %1151 = vperm.xlu1 %1566, %v1750_v33   ;;  %v1516_v33 = vld [vmem:[%s2333_s2 + $0x64] sm:$0xf0] }
 0x169   :  { %v1400_v34 = vor.u32 %v1514_v35, %v1399_v25  ;;  %v2144_v61 = vpop.permute.xlu1 %617  ;;  %v1522_v25 = vld [vmem:[%s2333_s2 + $0x94] sm:$0xf0] }
 0x16a   :  { %947 = vmatpush.bf16.msra.mxu2 %v557_v58  ;;  %1552 = vmatpush.bf16.msra.mxu3 %v557_v58 }
 0x16c   :  { %1159 = vperm.xlu0 %1565, %v1773_v37   ;;  %v2104_v37 = vpop.permute.xlu2 %585 }
 0x16d   :  { %880 = vmatmul.bf16.gmra.mxu1 %v1392_v22 }
 0x16e   :  { %948 = vmatpush.bf16.msra.mxu2 %v1946_v41  ;;  %1553 = vmatpush.bf16.msra.mxu3 %v1946_v41  ;;  %v1505_v41 = vld [vmem:[%s2333_s2 + $0x14] sm:$0xf] }
 0x16f   :  { %v1372_v11 = vor.u32 %v1505_v41, %v1369_v29 }
 0x170   :  { %1131 = vperm.xlu2 %1564, %v1785_v39   ;;  %v1465_v39 = vld [vmem:[%s2333_s2 + $0xd8] sm:$0xf0]  ;;  %1163 = vperm.xlu1 %1566, %v1768_v36   ;;  %v1377_v36 = vld [vmem:[%s2333_s2 + $0x28] sm:$0xf0] }
 0x171   :  { %949 = vmatmul.bf16.vlgmr.msra.gmra.mxu2 %v1364_v30  ;;  %1009 = vmatmul.bf16.vlgmr.msra.gmra.mxu3 %v1460_v43  ;;  %v1468_v15 = vor.u32 %v1529_v13, %v1465_v39  ;;  %v1431_v43 = vld [vmem:[%s2333_s2 + $0x90] sm:$0xf]  ;;  %v1513_v13 = vld [vmem:[%s2333_s2 + $0x54] sm:$0xf] }
 0x172   :  { %v1432_v29 = vor.u32 %v1522_v25, %v1431_v43  ;;  %v1519_v25 = vld [vmem:[%s2333_s2 + $0x84] sm:$0xf] }
 0x174   :  { %1171 = vperm.xlu0 %1565, %v2365_v49   ;;  %v2113_v52 = vpop.permute.xlu2 %597  ;;  %v1507_v49 = vld [vmem:[%s2333_s2 + $0x24] sm:$0xf] }
 0x178   :  { %1143 = vperm.xlu2 %1564, %v1803_v42   ;;  %v1408_v42 = vor.u32 %v1516_v33, %v1407_v59  ;;  %1175 = vperm.xlu1 %1566, %v2366_v44   ;;  %v1518_v44 = vld [vmem:[%s2333_s2 + $0x74] sm:$0xf0]  ;;  %v1439_v33 = vld [vmem:[%s2333_s2 + $0xa0] sm:$0xf] }
 0x17c   :  { %1183 = vperm.xlu0 %1565, %v2368_v63   ;;  %v1380_v63 = vor.u32 %v1507_v49, %v1377_v36  ;;  %v2141_v57 = vpop.permute.xlu2 %609 }
 0x17d   :  { %885 = vmatmul.bf16.gmra.mxu1 %v1400_v34 }
 0x180   :  { %1155 = vperm.xlu2 %1564, %v2364_v24   ;;  %v2138_v24 = vpop.permute.xlu0 %613  ;;  %1187 = vperm.xlu1 %1566, %v2369_v5   ;;  %v1385_v5 = vld [vmem:[%s2333_s2 + $0x38] sm:$0xf0] }
 0x181   :  { %954 = vmatmul.bf16.gmra.mxu2 %v1372_v11  ;;  %1014 = vmatmul.bf16.gmra.mxu3 %v1468_v15  ;;  %v1388_v40 = vor.u32 %v1509_v46, %v1385_v5 }
 0x184   :  { %v2156_v45 = vpop.permute.xlu2 %621 }
 0x188   :  { %1167 = vperm.xlu2 %1564, %v2367_v56   ;;  %v2146_v7 = vpop.permute.xlu0 %625  ;;  %v1416_v56 = vor.u32 %v1518_v44, %v1415_v54 }
 0x18c   :  { %v2174_v28 = vpop.permute.xlu2 %633 }
 0x18d   :  { %890 = vmatmul.bf16.gmra.mxu1 %v1408_v42  ;;  %v1524_v42 = vld [vmem:[%s2333_s2 + $0xa4] sm:$0xf0] }
 0x18e   :  { %v1440_v10 = vor.u32 %v1524_v42, %v1439_v33 }
 0x190   :  { %1179 = vperm.xlu2 %1564, %v2370_v6   ;;  %v2170_v6 = vpop.permute.xlu1 %629  ;;  %v2172_v20 = vpop.permute.xlu0 %637 }
 0x191   :  { %959 = vmatmul.bf16.gmra.mxu2 %v1380_v63  ;;  %1019 = vmatmul.bf16.gmra.mxu3 %v1476_v55  ;;  %v1515_v63 = vld [vmem:[%s2333_s2 + $0x64] sm:$0xf]  ;;  %v1409_v55 = vld [vmem:[%s2333_s2 + $0x68] sm:$0xf0] }
 0x192   :  { %v1412_v54 = vor.u32 %v1515_v63, %v1409_v55 }
 0x194   :  { %v2192_v27 = vpop.permute.xlu2 %645 }
 0x198   :  { %v2176_v60 = vpop.permute.xlu1 %641  ;;  %v2184_v14 = vpop.permute.xlu0 %649 }
 0x19c   :  { %v2199_v30 = vpop.permute.xlu2 %657 }
 0x19d   :  { %895 = vmatmul.bf16.gmra.mxu1 %v1416_v56 }
 0x1a0   :  { %v2194_v58 = vpop.permute.xlu1 %653  ;;  %v662_v8 = vpop.permute.xlu0 %661 }
 0x1a1   :  { %964 = vmatmul.bf16.gmra.mxu2 %v1388_v40  ;;  %1024 = vmatmul.bf16.gmra.mxu3 %v1484_v23 }
 0x1a4   :  { %v670_v11 = vpop.permute.xlu2 %669 }
 0x1a8   :  { %v666_v34 = vpop.permute.xlu1 %665  ;;  %v674_v36 = vpop.permute.xlu0 %673 }
 0x1aa   :  { %v861_v31 = vpop.f32.mrf.mxu1 }
 0x1ac   :  { %v682_v40 = vpop.permute.xlu2 %681 }
 0x1ad   :  { %900 = vmatmul.bf16.gmra.mxu1 %v1424_v18  ;;  %v1517_v18 = vld [vmem:[%s2333_s2 + $0x74] sm:$0xf] }
 0x1ae   :  { %v1420_v50 = vor.u32 %v1517_v18, %v1417_v47 }
 0x1b0   :  { %v921_v22 = vpop.f32.mrf.mxu3  ;;  %v678_v44 = vpop.permute.xlu1 %677 }
 0x1b1   :  { %969 = vmatmul.bf16.gmra.mxu2 %v1396_v26  ;;  %v2196_v4 = vadd.f32 %v921_v22, %v662_v8  ;;  %v686_v26 = vpop.permute.xlu0 %685 }
 0x1b2   :  { %v863_v32 = vpop.f32.mrf.mxu1 }
 0x1b3   :  { %v864_v48 = vadd.f32 %v863_v32, %v2077_v0  ;;  %v1401_v0 = vld [vmem:[%s2333_s2 + $0x58] sm:$0xf0] }
 0x1b4   :  { %v1404_v39 = vor.u32 %v1513_v13, %v1401_v0 }
 0x1b8   :  { %v923_v35 = vpop.f32.mrf.mxu3 }
 0x1b9   :  { %v2207_v41 = vadd.f32 %v923_v35, %v666_v34  ;;  %v1425_v35 = vld [vmem:[%s2333_s2 + $0x88] sm:$0xf0]  ;;  %v1068_v55 = vpop.permute.xlu0 %1067 }
 0x1ba   :  { %v866_v5 = vpop.f32.mrf.mxu1  ;;  %v1428_v34 = vor.u32 %v1519_v25, %v1425_v35 }
 0x1bd   :  { %905 = vmatmul.bf16.gmra.mxu1 %v1432_v29  ;;  %v862_v29 = vadd.f32 %v861_v31, %v2052_v53  ;;  %v1064_v31 = vpop.permute.xlu2 %1063 }
 0x1c0   :  { %v926_v15 = vpop.f32.mrf.mxu3 }
 0x1c1   :  { %974 = vmatmul.bf16.gmra.mxu2 %v1404_v39  ;;  %v2215_v59 = vadd.f32 %v926_v15, %v670_v11  ;;  %v1521_v11 = vld [vmem:[%s2333_s2 + $0x94] sm:$0xf]  ;;  %v1433_v15 = vld [vmem:[%s2333_s2 + $0x98] sm:$0xf0] }
 0x1c2   :  { %v868_v22 = vpop.f32.mrf.mxu1 }
 0x1c8   :  { %v928_v49 = vpop.f32.mrf.mxu3 }
 0x1c9   :  { %v2223_v12 = vadd.f32 %v928_v49, %v674_v36  ;;  %v1436_v36 = vor.u32 %v1521_v11, %v1433_v15 }
 0x1ca   :  { %v871_v43 = vpop.f32.mrf.mxu1 }
 0x1cd   :  { %910 = vmatmul.bf16.gmra.mxu1 %v1440_v10  ;;  %v2262_v10 = vpop.permute.xlu1 %689 }
 0x1d0   :  { %v931_v56 = vpop.f32.mrf.mxu3 }
 0x1d1   :  { %979 = vmatmul.bf16.gmra.mxu2 %v1412_v54  ;;  %v2231_v46 = vadd.f32 %v931_v56, %v678_v44  ;;  %v867_v54 = vadd.f32 %v866_v5, %v2055_v38  ;;  %v869_v38 = vadd.f32 %v868_v22, %v2074_v3  ;;  %v1525_v3 = vld [vmem:[%s2333_s2 + $0xb4] sm:$0xf]  ;;  %v1449_v22 = vld [vmem:[%s2333_s2 + $0xb8] sm:$0xf0] }
 0x1d2   :  { %v873_v13 = vpop.f32.mrf.mxu1 }
 0x1d8   :  { %v933_v23 = vpop.f32.mrf.mxu3 }
 0x1d9   :  { %v2239_v2 = vadd.f32 %v933_v23, %v682_v40 }
 0x1da   :  { %v876_v63 = vpop.f32.mrf.mxu1 }
 0x1dd   :  { %915 = vmatmul.bf16.gmra.mxu1 %v1448_v51  ;;  %v1072_v51 = vpop.permute.xlu1 %1071 }
 0x1e0   :  { %v936_v8 = vpop.f32.mrf.mxu3 }
 0x1e1   :  { %984 = vmatmul.bf16.gmra.mxu2 %v1420_v50  ;;  %v2247_v32 = vadd.f32 %v936_v8, %v686_v26  ;;  %v1441_v50 = vld [vmem:[%s2333_s2 + $0xa8] sm:$0xf0] }
 0x1e2   :  { %v878_v18 = vpop.f32.mrf.mxu1 }
 0x1f1   :  { %989 = vmatmul.bf16.gmra.mxu2 %v1428_v34  ;;  %v1076_v34 = vpop.permute.xlu2 %1075 }
 0x1f4   :  { %v950_v0 = vpop.f32.mrf.mxu2 }
 0x1f5   :  { %v951_v39 = vadd.f32 %v950_v0, %v862_v29  ;;  %v872_v29 = vadd.f32 %v871_v43, %v2079_v1 }
 0x1f7   :  { %v1030_v42 = vmax.f32 %v951_v39, 0.0  ;;  %v881_v39 = vpop.f32.mrf.mxu1 }
 0x1f9   :  { %v1190_v44 = vmul.f32 %v1064_v31, %v1030_v42 }
 0x1fc   :  { %v952_v33 = vpop.f32.mrf.mxu2 }
 0x1fd   :  { %v953_v49 = vadd.f32 %v952_v33, %v864_v48  ;;  %v1523_v48 = vld [vmem:[%s2333_s2 + $0xa4] sm:$0xf] }
 0x1fe   :  { %v1444_v25 = vor.u32 %v1523_v48, %v1441_v50  ;;  %v1088_v50 = vpop.permute.xlu0 %1087 }
 0x1ff   :  { %v1031_v53 = vmax.f32 %v953_v49, 0.0  ;;  %v1080_v49 = vpop.permute.xlu1 %1079  ;;  %v883_v43 = vpop.f32.mrf.mxu1 }
 0x201   :  { %v1191_v56 = vmul.f32 %v1068_v55, %v1031_v53  ;;  %994 = vmatmul.bf16.gmra.mxu2 %v1436_v36  ;;  %v874_v53 = vadd.f32 %v873_v13, %v2104_v37  ;;  %v879_v37 = vadd.f32 %v878_v18, %v2106_v17 }
 0x203   :  { %v1222_v16 = vadd.f32 %v1191_v56, %v1190_v44  ;;  %v1084_v56 = vpop.permute.xlu2 %1083 }
 0x204   :  { %v955_v21 = vpop.f32.mrf.mxu2 }
 0x205   :  { %v956_v40 = vadd.f32 %v955_v21, %v867_v54  ;;  %v1452_v54 = vor.u32 %v1525_v3, %v1449_v22 }
 0x206   :  { %v1100_v22 = vpop.permute.xlu0 %1099 }
 0x207   :  { %v1032_v23 = vmax.f32 %v956_v40, 0.0 }
 0x209   :  { %v1192_v47 = vmul.f32 %v1072_v51, %v1032_v23 }
 0x20b   :  { %v1223_v5 = vadd.f32 %v1222_v16, %v1192_v47  ;;  %v877_v16 = vadd.f32 %v876_v63, %v2093_v62  ;;  %v886_v47 = vpop.f32.mrf.mxu1  ;;  %v882_v62 = vadd.f32 %v881_v39, %v2113_v52 }
 0x20c   :  { %v957_v26 = vpop.f32.mrf.mxu2 }
 0x20d   :  { %v958_v8 = vadd.f32 %v957_v26, %v869_v38 }
 0x20f   :  { %v1033_v35 = vmax.f32 %v958_v8, 0.0 }
 0x211   :  { %v1193_v0 = vmul.f32 %v1076_v34, %v1033_v35  ;;  %999 = vmatmul.bf16.gmra.mxu2 %v1444_v25  ;;  %v1092_v25 = vpop.permute.xlu1 %1091 }
 0x213   :  { %v1224_v11 = vadd.f32 %v1223_v5, %v1193_v0  ;;  %v888_v35 = vpop.f32.mrf.mxu1 }
 0x214   :  { %v960_v15 = vpop.f32.mrf.mxu2 }
 0x215   :  { %v961_v33 = vadd.f32 %v960_v15, %v872_v29  ;;  %v1096_v15 = vpop.permute.xlu2 %1095 }
 0x217   :  { %v1034_v42 = vmax.f32 %v961_v33, 0.0 }
 0x219   :  { %v1194_v36 = vmul.f32 %v1080_v49, %v1034_v42  ;;  %v884_v49 = vadd.f32 %v883_v43, %v2111_v19 }
 0x21b   :  { %v1225_v1 = vadd.f32 %v1224_v11, %v1194_v36  ;;  %v891_v42 = vpop.f32.mrf.mxu1 }
 0x21c   :  { %v962_v31 = vpop.f32.mrf.mxu2 }
 0x21d   :  { %v963_v55 = vadd.f32 %v962_v31, %v874_v53 }
 0x21f   :  { %v1035_v44 = vmax.f32 %v963_v55, 0.0 }
 0x221   :  { %v1195_v21 = vmul.f32 %v1084_v56, %v1035_v44  ;;  %1004 = vmatmul.bf16.gmra.mxu2 %v1452_v54  ;;  %v1104_v44 = vpop.permute.xlu1 %1103 }
 0x223   :  { %v1226_v40 = vadd.f32 %v1225_v1, %v1195_v21  ;;  %v887_v1 = vadd.f32 %v886_v47, %v2122_v9  ;;  %v893_v55 = vpop.f32.mrf.mxu1 }
 0x224   :  { %v965_v23 = vpop.f32.mrf.mxu2 }
 0x225   :  { %v966_v51 = vadd.f32 %v965_v23, %v877_v16  ;;  %v889_v16 = vadd.f32 %v888_v35, %v2141_v57 }
 0x227   :  { %v1036_v48 = vmax.f32 %v966_v51, 0.0  ;;  %v1108_v51 = vpop.permute.xlu2 %1107 }
 0x229   :  { %v1196_v38 = vmul.f32 %v1088_v50, %v1036_v48  ;;  %v892_v50 = vadd.f32 %v891_v42, %v2138_v24  ;;  %v2290_v24 = vpop.f32.mrf.mxu3 }
 0x22b   :  { %v1227_v13 = vadd.f32 %v1226_v40, %v1196_v38  ;;  %v896_v43 = vpop.f32.mrf.mxu1 }
 0x22c   :  { %v967_v5 = vpop.f32.mrf.mxu2 }
 0x22d   :  { %v968_v26 = vadd.f32 %v967_v5, %v879_v37  ;;  %v1573_v37 = vmov 3   ;;  %v1112_v5 = vpop.permute.xlu0 %1111 }
 0x22e   :  { %1567 = vset.pattern.permute.xlu2 %v1573_v37  ;;  %1568 = vset.pattern.permute.xlu0 %v1573_v37 }
 0x22f   :  { %v1037_v8 = vmax.f32 %v968_v26, 0.0 }
 0x231   :  { %v1197_v34 = vmul.f32 %v1092_v25, %v1037_v8 }
 0x233   :  { %v1228_v63 = vadd.f32 %v1227_v13, %v1197_v34  ;;  %v1569_v13 = vld [vmem:[%s2331_s3] sm:$0xff]  ;;  %v898_v26 = vpop.f32.mrf.mxu1 }
 0x234   :  { %v970_v29 = vpop.f32.mrf.mxu2  ;;  %1260 = vperm.xlu2 %1567, %v1569_v13  }
 0x235   :  { %v971_v0 = vadd.f32 %v970_v29, %v882_v62 }
 0x237   :  { %v1038_v11 = vmax.f32 %v971_v0, 0.0  ;;  %v2292_v0 = vpop.f32.mrf.mxu3 }
 0x239   :  { %v1198_v33 = vmul.f32 %v1096_v15, %v1038_v11 }
 0x23b   :  { %v1229_v36 = vadd.f32 %v1228_v63, %v1198_v33  ;;  %v901_v34 = vpop.f32.mrf.mxu1 }
 0x23c   :  { %v972_v17 = vpop.f32.mrf.mxu2 }
 0x23d   :  { %v973_v18 = vadd.f32 %v972_v17, %v884_v49 }
 0x23f   :  { %v1039_v3 = vmax.f32 %v973_v18, 0.0  ;;  %v2294_v33 = vpop.f32.mrf.mxu3 }
 0x241   :  { %v1199_v53 = vmul.f32 %v1100_v22, %v1039_v3  ;;  %v1120_v3 = vpop.permute.xlu2 %1119  ;;  %v1124_v22 = vpop.permute.xlu0 %1123 }
 0x243   :  { %v1230_v31 = vadd.f32 %v1229_v36, %v1199_v53  ;;  %v903_v63 = vpop.f32.mrf.mxu1  ;;  %v1116_v36 = vpop.permute.xlu1 %1115 }
 0x244   :  { %v975_v52 = vpop.f32.mrf.mxu2 }
 0x245   :  { %v976_v39 = vadd.f32 %v975_v52, %v887_v1 }
 0x247   :  { %v1040_v54 = vmax.f32 %v976_v39, 0.0  ;;  %v2296_v17 = vpop.f32.mrf.mxu3  ;;  %v894_v39 = vadd.f32 %v893_v55, %v2144_v61 }
 0x249   :  { %v1200_v56 = vmul.f32 %v1104_v44, %v1040_v54  ;;  %v1132_v54 = vpop.permute.xlu2 %1131  ;;  %v1136_v44 = vpop.permute.xlu0 %1135 }
 0x24b   :  { %v1231_v21 = vadd.f32 %v1230_v31, %v1200_v56  ;;  %v906_v15 = vpop.f32.mrf.mxu1  ;;  %v1128_v31 = vpop.permute.xlu1 %1127  ;;  %v897_v56 = vadd.f32 %v896_v43, %v2156_v45 }
 0x24c   :  { %v977_v40 = vpop.f32.mrf.mxu2  ;;  %v907_v37 = vadd.f32 %v906_v15, %v2172_v20 }
 0x24d   :  { %v978_v19 = vadd.f32 %v977_v40, %v889_v16 }
 0x24f   :  { %v1041_v23 = vmax.f32 %v978_v19, 0.0  ;;  %v2298_v52 = vpop.f32.mrf.mxu3  ;;  %v899_v19 = vadd.f32 %v898_v26, %v2146_v7 }
 0x251   :  { %v1201_v48 = vmul.f32 %v1108_v51, %v1041_v23 }
 0x253   :  { %v1232_v38 = vadd.f32 %v1231_v21, %v1201_v48  ;;  %v908_v49 = vpop.f32.mrf.mxu1  ;;  %v1140_v51 = vpop.permute.xlu1 %1139  ;;  %v902_v48 = vadd.f32 %v901_v34, %v2170_v6 }
 0x254   :  { %v980_v9 = vpop.f32.mrf.mxu2  ;;  %v909_v7 = vadd.f32 %v908_v49, %v2176_v60 }
 0x255   :  { %v981_v47 = vadd.f32 %v980_v9, %v892_v50 }
 0x257   :  { %v1042_v57 = vmax.f32 %v981_v47, 0.0  ;;  %v2304_v9 = vpop.f32.mrf.mxu3  ;;  %v904_v47 = vadd.f32 %v903_v63, %v2174_v28 }
 0x259   :  { %v1202_v8 = vmul.f32 %v1112_v5, %v1042_v57  ;;  %v1144_v57 = vpop.permute.xlu2 %1143 }
 0x25b   :  { %v1233_v25 = vadd.f32 %v1232_v38, %v1202_v8  ;;  %v911_v53 = vpop.f32.mrf.mxu1  ;;  %v1152_v15 = vpop.permute.xlu1 %1151 }
 0x25c   :  { %v982_v35 = vpop.f32.mrf.mxu2  ;;  %v912_v34 = vadd.f32 %v911_v53, %v2192_v27 }
 0x25d   :  { %v983_v16 = vadd.f32 %v982_v35, %v894_v39  ;;  %v1148_v35 = vpop.permute.xlu0 %1147 }
 0x25f   :  { %v1043_v50 = vmax.f32 %v983_v16, 0.0  ;;  %v1022_v16 = vpop.f32.mrf.mxu3 }
 0x261   :  { %v1203_v45 = vmul.f32 %v1116_v36, %v1043_v50 }
 0x263   :  { %v913_v21 = vpop.f32.mrf.mxu1 }
 0x264   :  { %v985_v62 = vpop.f32.mrf.mxu2  ;;  %v914_v20 = vadd.f32 %v913_v21, %v2184_v14 }
 0x265   :  { %v986_v23 = vadd.f32 %v985_v62, %v897_v56  ;;  %v1160_v50 = vpop.permute.xlu0 %1159 }
 0x267   :  { %v1044_v61 = vmax.f32 %v986_v23, 0.0 }
 0x269   :  { %v1204_v26 = vmul.f32 %v1120_v3, %v1044_v61 }
 0x26b   :  { %v916_v62 = vpop.f32.mrf.mxu1 }
 0x26c   :  { %v987_v29 = vpop.f32.mrf.mxu2  ;;  %v917_v60 = vadd.f32 %v916_v62, %v2194_v58  ;;  %v1011_v58 = vadd.f32 %v2292_v0, %v2196_v4 }
 0x26d   :  { %v988_v38 = vadd.f32 %v987_v29, %v899_v19  ;;  %v1234_v29 = vadd.f32 %v1233_v25, %v1203_v45 }
 0x26f   :  { %v1045_v43 = vmax.f32 %v988_v38, 0.0  ;;  %v1235_v36 = vadd.f32 %v1234_v29, %v1204_v26 }
 0x271   :  { %v1205_v28 = vmul.f32 %v1124_v22, %v1045_v43  ;;  %v1013_v43 = vadd.f32 %v2294_v33, %v2207_v41  ;;  %v1021_v41 = vadd.f32 %v2304_v9, %v2231_v46 }
 0x273   :  { %v1236_v49 = vadd.f32 %v1235_v36, %v1205_v28  ;;  %v1055_v0 = vmax.f32 %v1013_v43, 0.0 }
 0x274   :  { %v990_v11 = vpop.f32.mrf.mxu2 }
 0x275   :  { %v991_v55 = vadd.f32 %v990_v11, %v902_v48 }
 0x277   :  { %v1046_v8 = vmax.f32 %v991_v55, 0.0 }
 0x27c   :  { %v992_v42 = vpop.f32.mrf.mxu2 }
 0x27d   :  { %v993_v13 = vadd.f32 %v992_v42, %v904_v47  ;;  %v1206_v42 = vmul.f32 %v1128_v31, %v1046_v8  ;;  %v918_v31 = vpop.f32.mrf.mxu1 }
 0x27e   :  { %v919_v61 = vadd.f32 %v918_v31, %v2199_v30  ;;  %v1018_v30 = vadd.f32 %v2298_v52, %v2223_v12  ;;  %v1058_v12 = vmax.f32 %v1021_v41, 0.0 }
 0x27f   :  { %v1047_v63 = vmax.f32 %v993_v13, 0.0  ;;  %v1237_v53 = vadd.f32 %v1236_v49, %v1206_v42 }
 0x280   :  { %v1057_v28 = vmax.f32 %v1018_v30, 0.0 }
 0x284   :  { %v995_v18 = vpop.f32.mrf.mxu2 }
 0x285   :  { %v996_v6 = vadd.f32 %v995_v18, %v907_v37  ;;  %v1207_v18 = vmul.f32 %v1132_v54, %v1047_v63  ;;  %v1164_v54 = vpop.permute.xlu1 %1163 }
 0x286   :  { %v1215_v63 = vmul.f32 %v1164_v54, %v1055_v0 }
 0x287   :  { %v1048_v39 = vmax.f32 %v996_v6, 0.0  ;;  %v1238_v48 = vadd.f32 %v1237_v53, %v1207_v18 }
 0x289   :  { %v1208_v25 = vmul.f32 %v1136_v44, %v1048_v39  ;;  %v1025_v44 = vpop.f32.mrf.mxu3 }
 0x28a   :  { %v1026_v36 = vadd.f32 %v1025_v44, %v2247_v32 }
 0x28b   :  { %v1239_v38 = vadd.f32 %v1238_v48, %v1208_v25 }
 0x28c   :  { %v997_v1 = vpop.f32.mrf.mxu2  ;;  %v1060_v18 = vmax.f32 %v1026_v36, 0.0 }
 0x28d   :  { %v998_v11 = vadd.f32 %v997_v1, %v909_v7  ;;  %v1156_v1 = vpop.permute.xlu2 %1155  ;;  %v1054_v7 = vmax.f32 %v1011_v58, 0.0 }
 0x28f   :  { %v1049_v3 = vmax.f32 %v998_v11, 0.0  ;;  %v1214_v33 = vmul.f32 %v1160_v50, %v1054_v7  ;;  %v939_v11 = vadd.f32 %v2290_v24, %v2262_v10 }
 0x291   :  { %v1209_v14 = vmul.f32 %v1140_v51, %v1049_v3 }
 0x293   :  { %v1240_v55 = vadd.f32 %v1239_v38, %v1209_v14 }
 0x294   :  { %v1000_v40 = vpop.f32.mrf.mxu2 }
 0x295   :  { %v1001_v56 = vadd.f32 %v1000_v40, %v912_v34  ;;  %v1168_v4 = vpop.permute.xlu2 %1167  ;;  %v1172_v34 = vpop.permute.xlu0 %1171 }
 0x297   :  { %v1050_v22 = vmax.f32 %v1001_v56, 0.0  ;;  %v1217_v56 = vmul.f32 %v1172_v34, %v1057_v28 }
 0x299   :  { %v1210_v40 = vmul.f32 %v1144_v57, %v1050_v22  ;;  %v1016_v57 = vadd.f32 %v2296_v17, %v2215_v59  ;;  %v1023_v59 = vadd.f32 %v1022_v16, %v2239_v2 }
 0x29b   :  { %v1241_v51 = vadd.f32 %v1240_v55, %v1210_v40  ;;  %v1056_v62 = vmax.f32 %v1016_v57, 0.0  ;;  %v1059_v39 = vmax.f32 %v1023_v59, 0.0 }
 0x29c   :  { %v1002_v5 = vpop.f32.mrf.mxu2 }
 0x29d   :  { %v1003_v19 = vadd.f32 %v1002_v5, %v914_v20  ;;  %v1176_v20 = vpop.permute.xlu1 %1175  ;;  %v1216_v52 = vmul.f32 %v1168_v4, %v1056_v62  ;;  %v1184_v2 = vpop.permute.xlu0 %1183 }
 0x29e   :  { %v1218_v49 = vmul.f32 %v1176_v20, %v1058_v12  ;;  %v1220_v24 = vmul.f32 %v1184_v2, %v1060_v18 }
 0x29f   :  { %v1051_v21 = vmax.f32 %v1003_v19, 0.0 }
 0x2a1   :  { %v1211_v37 = vmul.f32 %v1148_v35, %v1051_v21 }
 0x2a3   :  { %v1242_v26 = vadd.f32 %v1241_v51, %v1211_v37 }
 0x2a4   :  { %v1005_v27 = vpop.f32.mrf.mxu2 }
 0x2a5   :  { %v1006_v23 = vadd.f32 %v1005_v27, %v917_v60  ;;  %v1180_v60 = vpop.permute.xlu2 %1179  ;;  %v1188_v10 = vpop.permute.xlu1 %1187 }
 0x2a6   :  { %v1219_v16 = vmul.f32 %v1180_v60, %v1059_v39 }
 0x2a7   :  { %v1052_v47 = vmax.f32 %v1006_v23, 0.0 }
 0x2a9   :  { %v1212_v13 = vmul.f32 %v1152_v15, %v1052_v47  ;;  %v1027_v15 = vpop.f32.mrf.mxu3 }
 0x2aa   :  { %v1028_v46 = vadd.f32 %v1027_v15, %v939_v11 }
 0x2ab   :  { %v1243_v6 = vadd.f32 %v1242_v26, %v1212_v13 }
 0x2ac   :  { %v1007_v45 = vpop.f32.mrf.mxu2  ;;  %v1061_v19 = vmax.f32 %v1028_v46, 0.0 }
 0x2ad   :  { %v1008_v5 = vadd.f32 %v1007_v45, %v919_v61  ;;  %v1261_v50 = vpop.permute.xlu2 %1260 }
 0x2ae   :  { %v1221_v25 = vmul.f32 %v1188_v10, %v1061_v19 }
 0x2af   :  { %v1053_v8 = vmax.f32 %v1008_v5, 0.0 }
 0x2b1   :  { %v1213_v35 = vmul.f32 %v1156_v1, %v1053_v8 }
 0x2b3   :  { %v1244_v29 = vadd.f32 %v1243_v6, %v1213_v35 }
 0x2b5   :  { %v1245_v17 = vadd.f32 %v1244_v29, %v1214_v33 }
 0x2b7   :  { %v1246_v42 = vadd.f32 %v1245_v17, %v1215_v63 }
 0x2b9   :  { %v1247_v9 = vadd.f32 %v1246_v42, %v1216_v52 }
 0x2bb   :  { %v1248_v3 = vadd.f32 %v1247_v9, %v1217_v56 }
 0x2bd   :  { %v1249_v27 = vadd.f32 %v1248_v3, %v1218_v49 }
 0x2bf   :  { %v1250_v53 = vadd.f32 %v1249_v27, %v1219_v16 }
 0x2c1   :  { %v1251_v22 = vadd.f32 %v1250_v53, %v1220_v24 }
 0x2c3   :  { %v1252_v23 = vadd.f32 %v1251_v22, %v1221_v25 }
 0x2c5   :  { %v1253_v32 = vrot.slane %v1252_v23, 4 }
 0x2c7   :  { %v1254_v1 = vadd.f32 %v1253_v32, %v1252_v23 }
 0x2c9   :  { %v1255_v48 = vrot.slane %v1254_v1, 2 }
 0x2cb   :  { %v1256_v14 = vadd.f32 %v1255_v48, %v1254_v1 }
 0x2cd   :  { %v1257_v21 = vrot.slane %v1256_v14, 1 }
 0x2cf   :  { %v1258_v31 = vadd.f32 %v1257_v21, %v1256_v14 }
 0x2d1   :  { %v1263_v38 = vadd.f32 %v1261_v50, %v1258_v31 }
 0x2d3   :  { %1264 = vst [vmem:[%s2334_s4] sm:$0x1] %v1263_v38 }

</bundles_post_ra>
